<compile_context>
chip_gen: v5e
topology: v5e:2x2
jax: 0.10.0
libtpu: 0.0.40
codegen_flags: <defaults>
</compile_context>

<pallas_src>
import functools
import math

import jax
import jax.numpy as jnp
from jax.experimental import pallas as pl
from jax.experimental.pallas import tpu as pltpu


ACTIVATIONS = ("Sigmoid", "Tanh", "ReLU", "LeakyReLU", "Linear")


def _round_up(n: int, m: int) -> int:
    return ((n + m - 1) // m) * m


def _apply_activation(y, name: str):
    if name == "ReLU":
        return jnp.maximum(y, 0.0)
    if name == "Sigmoid":
        return jax.nn.sigmoid(y)
    if name == "Tanh":
        return jnp.tanh(y)
    if name == "LeakyReLU":
        # PyTorch default negative_slope = 0.01
        return jnp.where(y >= 0.0, y, 0.01 * y)
    if name == "Linear":
        return y
    raise ValueError(f"unknown activation {name!r}")


# ----------------------------------------------------------------------------
# Fused whole-MLP kernel for ONE batch tile.
# refs layout: (w0, b0, w1, b1, ..., w_{L-1}, b_{L-1}, out)
# ----------------------------------------------------------------------------
def _mlp_kernel(x_ref, *refs, steps, n_linear):
    *param_refs, o_ref = refs            # robust vs. future scratch additions
    assert len(param_refs) == 2 * n_linear
    w_refs = param_refs[0::2]            # bf16 (In_pad, Out_pad)
    b_refs = param_refs[1::2]            # f32  (1, Out_pad)

    h = x_ref[...]                       # bf16 (TB, F0_pad)
    for kind, arg in steps:              # static unroll of the layer plan
        if kind == "linear":
            w = w_refs[arg][...]
            b = b_refs[arg][...]
            lhs = h if h.dtype == jnp.bfloat16 else h.astype(jnp.bfloat16)
            # TODO(synk): for hidden widths >~512 add an inner K-tiling grid
            # axis ("arbitrary") with an f32 accumulator scratch instead of
            # one full-width dot; irrelevant for the 32/64-wide demo config.
            h = jnp.dot(lhs, w, preferred_element_type=jnp.float32) + b
        else:                            # bare activation step (f32)
            h = _apply_activation(h, arg)
    o_ref[...] = h.astype(o_ref.dtype)


# ----------------------------------------------------------------------------
# Net: builds the layer list exactly like the PyTorch module's __init__
# ----------------------------------------------------------------------------
class Net:
    def __init__(self, layers, num_features, num_classes, layer_limit, key):
        max_layers = 7
        if max_layers < layer_limit:
            raise Exception(
                f"Maximum layers that ChildNet accepts is {max_layers}")

        # plan: list of ("linear", (in, out)) or ("act", name)
        plan = []
        hidd_unit_prev = num_features
        for layer in layers:
            if isinstance(layer, int):
                plan.append(("linear", (hidd_unit_prev, layer)))
                hidd_unit_prev = layer
            elif layer == "EOS":
                break
            else:
                assert layer in ACTIVATIONS
                plan.append(("act", layer))
        plan.append(("linear", (hidd_unit_prev, num_classes)))
        # Padded-lane safety (sigmoid(0)=0.5 etc. in padded lanes) relies on
        # the plan ending with a Linear whose padded weight rows are zero.
        assert plan[-1][0] == "linear"
        self.plan = plan
        self.num_features = num_features
        self.num_classes = num_classes

        # Deterministic parameter init (PyTorch-style uniform(-1/sqrt(in), ..)).
        # Keep f32 originals (reference) plus padded bf16/f32 kernel copies
        # built ONCE here.
        self.params_f32 = []       # [(w_f32 (in,out), b_f32 (out,)), ...]
        flat_padded = []           # [w0_pad, b0_pad, w1_pad, b1_pad, ...]
        steps = []                 # [("linear", lin_idx) | ("act", name), ...]
        lin_idx = 0
        max_width_pad = _round_up(num_features, 128)
        for kind, spec in plan:
            if kind == "linear":
                in_f, out_f = spec
                key, kw, kb = jax.random.split(key, 3)
                bound = 1.0 / math.sqrt(in_f)
                w = jax.random.uniform(kw, (in_f, out_f), jnp.float32,
                                       -bound, bound)
                b = jax.random.uniform(kb, (out_f,), jnp.float32,
                                       -bound, bound)
                self.params_f32.append((w, b))

                in_p, out_p = _round_up(in_f, 128), _round_up(out_f, 128)
                max_width_pad = max(max_width_pad, out_p)
                w_pad = jnp.zeros((in_p, out_p), jnp.bfloat16)
                w_pad = w_pad.at[:in_f, :out_f].set(w.astype(jnp.bfloat16))
                b_pad = jnp.zeros((1, out_p), jnp.float32)
                b_pad = b_pad.at[0, :out_f].set(b)
                flat_padded += [w_pad, b_pad]
                steps.append(("linear", lin_idx))
                lin_idx += 1
            else:
                steps.append(("act", spec))

        self._steps = tuple(steps)
        self._n_linear = lin_idx
        self._flat_padded = tuple(flat_padded)
        self._in_pad = _round_up(num_features, 128)
        self._out_pad = _round_up(num_classes, 128)

        weight_bytes = sum(int(p.size) * p.dtype.itemsize for p in flat_padded)
        in_pad = self._in_pad
        out_pad = self._out_pad
        n_cls = self.num_classes
        kernel = functools.partial(_mlp_kernel, steps=self._steps,
                                   n_linear=self._n_linear)

        def fwd(x, *params):
            batch, nf = x.shape
            x = x.astype(jnp.bfloat16)

            # Batch tile: up to 256 rows (fills v6e/v7x MXU M dim, >=128 for
            # v5e); tiny batches collapse to one small tile.
            tb = min(256, _round_up(max(batch, 8), 8))
            b_pad = _round_up(max(batch, 8), tb)
            x_pad = jnp.pad(x, ((0, b_pad - batch), (0, in_pad - nf)))

            # VMEM budget from actual padded sizes (weights conservatively
            # counted double-buffered + double-buffered io tiles + live h),
            # clamped to 64 MiB so it also fits v7x's smaller VMEM.
            io_bytes = 2 * (tb * in_pad * 2 + tb * out_pad * 4)
            act_bytes = 4 * tb * max_width_pad * 4
            vmem_limit = min(max(2 * weight_bytes + io_bytes + act_bytes
                                 + (4 << 20), 32 << 20), 64 << 20)

            param_specs = [pl.BlockSpec(p.shape, lambda i: (0, 0))
                           for p in params]     # resident across grid steps

            out = pl.pallas_call(
                kernel,
                out_shape=jax.ShapeDtypeStruct((b_pad, out_pad), jnp.float32),
                grid=(b_pad // tb,),
                in_specs=[pl.BlockSpec((tb, in_pad), lambda i: (i, 0))]
                         + param_specs,
                out_specs=pl.BlockSpec((tb, out_pad), lambda i: (i, 0)),
                compiler_params=pltpu.CompilerParams(
                    dimension_semantics=("parallel",),   # v7x megacore shard
                    vmem_limit_bytes=vmem_limit),
            )(x_pad, *params)
            return out[:batch, :n_cls]

        self._fwd = jax.jit(fwd)

    def forward(self, x):
        """x: (batch, num_features) -> (batch, num_classes) f32."""
        return self._fwd(x, *self._flat_padded)

    # Plain-JAX reference with matching precision (bf16 operands, f32 accum).
    def reference(self, x):
        h = x.astype(jnp.bfloat16)
        lin_idx = 0
        for kind, spec in self.plan:
            if kind == "linear":
                w, b = self.params_f32[lin_idx]
                lin_idx += 1
                h = jnp.dot(h.astype(jnp.bfloat16), w.astype(jnp.bfloat16),
                            preferred_element_type=jnp.float32) + b
            else:
                h = _apply_activation(h, spec)
        return h


# ----------------------------------------------------------------------------
if __name__ == "__main__":
    key = jax.random.PRNGKey(0)
    key, kparams, kx = jax.random.split(key, 3)

    # Small, module-consistent config: 2 hidden Linear layers + activations.
    layers = [32, "ReLU", 32, "Tanh", "EOS", 64]   # everything after EOS ignored
    num_features = 16
    num_classes = 10
    layer_limit = 7
    batch = 8

    net = Net(layers, num_features, num_classes, layer_limit, kparams)

    x = jax.random.normal(kx, (batch, num_features), jnp.float32)
    out = jax.block_until_ready(net.forward(x))
    ref = net.reference(x)
    assert out.shape == (batch, num_classes)
    assert jnp.allclose(out, ref, atol=1e-3, rtol=1e-3), (
        float(jnp.max(jnp.abs(out - ref))))

    # Also exercise the in-jit pad/slice path with a non-multiple-of-8 batch.
    x2 = jax.random.normal(key, (3, num_features), jnp.float32)
    out2 = jax.block_until_ready(net.forward(x2))
    ref2 = net.reference(x2)
    assert out2.shape == (3, num_classes)
    assert jnp.allclose(out2, ref2, atol=1e-3, rtol=1e-3), (
        float(jnp.max(jnp.abs(out2 - ref2))))

    print("KERNEL_OK")
</pallas_src>

<mosaic_0001>
module attributes {stable_mosaic.version = 11 : i64} {
  func.func @_mlp_kernel(%arg0: i32, %arg1: memref<8x128xbf16, #tpu.memory_space<vmem>>, %arg2: memref<128x128xbf16, #tpu.memory_space<vmem>>, %arg3: memref<1x128xf32, #tpu.memory_space<vmem>>, %arg4: memref<128x128xbf16, #tpu.memory_space<vmem>>, %arg5: memref<1x128xf32, #tpu.memory_space<vmem>>, %arg6: memref<128x128xbf16, #tpu.memory_space<vmem>>, %arg7: memref<1x128xf32, #tpu.memory_space<vmem>>, %arg8: memref<8x128xf32, #tpu.memory_space<vmem>>) attributes {dimension_semantics = [#tpu.dimension_semantics<parallel>], iteration_bounds = array<i64: 1>, scalar_prefetch = 0 : i64, scratch_operands = 0 : i64, tpu.core_type = #tpu.core_type<tc>, window_params = [{transform_indices = @transform_0, window_bounds = array<i64: 8, 128>}, {pipeline_mode = #tpu.pipeline_mode<synchronous>, transform_indices = @transform_1, window_bounds = array<i64: 128, 128>}, {pipeline_mode = #tpu.pipeline_mode<synchronous>, transform_indices = @transform_2, window_bounds = array<i64: 1, 128>}, {pipeline_mode = #tpu.pipeline_mode<synchronous>, transform_indices = @transform_3, window_bounds = array<i64: 128, 128>}, {pipeline_mode = #tpu.pipeline_mode<synchronous>, transform_indices = @transform_4, window_bounds = array<i64: 1, 128>}, {pipeline_mode = #tpu.pipeline_mode<synchronous>, transform_indices = @transform_5, window_bounds = array<i64: 128, 128>}, {pipeline_mode = #tpu.pipeline_mode<synchronous>, transform_indices = @transform_6, window_bounds = array<i64: 1, 128>}, {transform_indices = @transform_7, window_bounds = array<i64: 8, 128>}]} {
    %c0 = arith.constant 0 : index
    %c0_0 = arith.constant 0 : index
    %0 = vector.load %arg1[%c0, %c0_0] : memref<8x128xbf16, #tpu.memory_space<vmem>>, vector<8x128xbf16>
    %c0_1 = arith.constant 0 : index
    %c0_2 = arith.constant 0 : index
    %1 = vector.load %arg2[%c0_1, %c0_2] : memref<128x128xbf16, #tpu.memory_space<vmem>>, vector<128x128xbf16>
    %c0_3 = arith.constant 0 : index
    %c0_4 = arith.constant 0 : index
    %2 = vector.load %arg3[%c0_3, %c0_4] : memref<1x128xf32, #tpu.memory_space<vmem>>, vector<1x128xf32>
    %cst = arith.constant dense<0.000000e+00> : vector<8x128xf32>
    %3 = tpu.matmul %0, %1, %cst {dimension_numbers = #tpu.dot_dimension_numbers<[1], [0], [0], [1], [0, 0, 1, 1], [], []>} : vector<8x128xbf16>, vector<128x128xbf16>, vector<8x128xf32> -> vector<8x128xf32>
    %4 = vector.broadcast %2 : vector<1x128xf32> to vector<8x128xf32>
    %5 = arith.addf %3, %4 : vector<8x128xf32>
    %cst_5 = arith.constant 0.000000e+00 : f32
    %6 = vector.broadcast %cst_5 : f32 to vector<8x128xf32>
    %7 = arith.maximumf %5, %6 : vector<8x128xf32>
    %c0_6 = arith.constant 0 : index
    %c0_7 = arith.constant 0 : index
    %8 = vector.load %arg4[%c0_6, %c0_7] : memref<128x128xbf16, #tpu.memory_space<vmem>>, vector<128x128xbf16>
    %c0_8 = arith.constant 0 : index
    %c0_9 = arith.constant 0 : index
    %9 = vector.load %arg5[%c0_8, %c0_9] : memref<1x128xf32, #tpu.memory_space<vmem>>, vector<1x128xf32>
    %10 = arith.truncf %7 : vector<8x128xf32> to vector<8x128xbf16>
    %cst_10 = arith.constant dense<0.000000e+00> : vector<8x128xf32>
    %11 = tpu.matmul %10, %8, %cst_10 {dimension_numbers = #tpu.dot_dimension_numbers<[1], [0], [0], [1], [0, 0, 1, 1], [], []>} : vector<8x128xbf16>, vector<128x128xbf16>, vector<8x128xf32> -> vector<8x128xf32>
    %12 = vector.broadcast %9 : vector<1x128xf32> to vector<8x128xf32>
    %13 = arith.addf %11, %12 : vector<8x128xf32>
    %14 = math.tanh %13 : vector<8x128xf32>
    %c0_11 = arith.constant 0 : index
    %c0_12 = arith.constant 0 : index
    %15 = vector.load %arg6[%c0_11, %c0_12] : memref<128x128xbf16, #tpu.memory_space<vmem>>, vector<128x128xbf16>
    %c0_13 = arith.constant 0 : index
    %c0_14 = arith.constant 0 : index
    %16 = vector.load %arg7[%c0_13, %c0_14] : memref<1x128xf32, #tpu.memory_space<vmem>>, vector<1x128xf32>
    %17 = arith.truncf %14 : vector<8x128xf32> to vector<8x128xbf16>
    %cst_15 = arith.constant dense<0.000000e+00> : vector<8x128xf32>
    %18 = tpu.matmul %17, %15, %cst_15 {dimension_numbers = #tpu.dot_dimension_numbers<[1], [0], [0], [1], [0, 0, 1, 1], [], []>} : vector<8x128xbf16>, vector<128x128xbf16>, vector<8x128xf32> -> vector<8x128xf32>
    %19 = vector.broadcast %16 : vector<1x128xf32> to vector<8x128xf32>
    %20 = arith.addf %18, %19 : vector<8x128xf32>
    %c0_16 = arith.constant 0 : index
    %c0_17 = arith.constant 0 : index
    %21 = vector.load %arg8[%c0_16, %c0_17] : memref<8x128xf32, #tpu.memory_space<vmem>>, vector<8x128xf32>
    tpu.vector_store %arg8[%c0_16, %c0_17], %20 {strides = array<i32>} : memref<8x128xf32, #tpu.memory_space<vmem>>, vector<8x128xf32>,
    return
  }
  func.func @transform_0(%arg0: i32) -> (i32, i32) {
    %c0_i32 = arith.constant 0 : i32
    %c0_i32_0 = arith.constant 0 : i32
    return %arg0, %c0_i32 : i32, i32
  }
  func.func @transform_1(%arg0: i32) -> (i32, i32) {
    %c0_i32 = arith.constant 0 : i32
    %c0_i32_0 = arith.constant 0 : i32
    %c0_i32_1 = arith.constant 0 : i32
    return %c0_i32, %c0_i32_0 : i32, i32
  }
  func.func @transform_2(%arg0: i32) -> (i32, i32) {
    %c0_i32 = arith.constant 0 : i32
    %c0_i32_0 = arith.constant 0 : i32
    %c0_i32_1 = arith.constant 0 : i32
    return %c0_i32, %c0_i32_0 : i32, i32
  }
  func.func @transform_3(%arg0: i32) -> (i32, i32) {
    %c0_i32 = arith.constant 0 : i32
    %c0_i32_0 = arith.constant 0 : i32
    %c0_i32_1 = arith.constant 0 : i32
    return %c0_i32, %c0_i32_0 : i32, i32
  }
  func.func @transform_4(%arg0: i32) -> (i32, i32) {
    %c0_i32 = arith.constant 0 : i32
    %c0_i32_0 = arith.constant 0 : i32
    %c0_i32_1 = arith.constant 0 : i32
    return %c0_i32, %c0_i32_0 : i32, i32
  }
  func.func @transform_5(%arg0: i32) -> (i32, i32) {
    %c0_i32 = arith.constant 0 : i32
    %c0_i32_0 = arith.constant 0 : i32
    %c0_i32_1 = arith.constant 0 : i32
    return %c0_i32, %c0_i32_0 : i32, i32
  }
  func.func @transform_6(%arg0: i32) -> (i32, i32) {
    %c0_i32 = arith.constant 0 : i32
    %c0_i32_0 = arith.constant 0 : i32
    %c0_i32_1 = arith.constant 0 : i32
    return %c0_i32, %c0_i32_0 : i32, i32
  }
  func.func @transform_7(%arg0: i32) -> (i32, i32) {
    %c0_i32 = arith.constant 0 : i32
    %c0_i32_0 = arith.constant 0 : i32
    return %arg0, %c0_i32 : i32, i32
  }
}

</mosaic_0001>

<bundles_post_ra>
// kernel: fwd.1
= control target key start
LH: loop header
LB: loop body
LE: loop exit
PB: predicated region body
PF: predicated region fallthrough
CT: control target
= control target key end

     0   :  { %12 = vsyncpa [#allocation3], 0  ;;  %s644_s0 = inlined_call_operand.vmem [shape: bf16[8,128], index: 0, kind: input, shape index: {}]   ;;  %s645_s1 = inlined_call_operand.hbm [shape: bf16[128,128], index: 1, kind: input, shape index: {}]   ;;  %s646_s2 = inlined_call_operand.vmem [shape: f32[1,128], index: 2, kind: input, shape index: {}]   ;;  %s647_s3 = inlined_call_operand.hbm [shape: bf16[128,128], index: 3, kind: input, shape index: {}]   ;;  %s648_s4 = inlined_call_operand.vmem [shape: f32[1,128], index: 4, kind: input, shape index: {}]   ;;  %s649_s5 = inlined_call_operand.hbm [shape: bf16[128,128], index: 5, kind: input, shape index: {}]   ;;  %s650_s6 = inlined_call_operand.vmem [shape: f32[1,128], index: 6, kind: input, shape index: {}]   ;;  %s651_s7 = inlined_call_operand.hbm [shape: f32[8,128], index: 7, kind: output, shape index: {}]  }
   0x1   :  { %13 = vsyncpa [#allocation6], 0 }
   0x2   :  { %14 = vsyncpa [#allocation4], 0  ;;  %s36_s26 = sshll.u32 %s647_s3, 4  ;;  %s574_s27 = smov [#allocation5]   ;;  %s37_s26 = int_to_ptr.hbm [resolvable:$true] %s36_s26 }
   0x3   :  { %s38_s28 = sshll.u32 %s574_s27, 4  ;;  %s21_s8 = sshll.u32 %s645_s1, 4  ;;  %s39_s28 = int_to_ptr.vmem [resolvable:$true] %s38_s28  ;;  %s22_s8 = int_to_ptr.hbm [resolvable:$true] %s21_s8 }
   0x4   :  { %s575_s9 = smov 64   ;;  %s576_s10 = smov 4  }
   0x5   :  { %44 = dma.hbm_to_vmem [thread:$0]  %s37_s26, 1024, %s39_s28, [#allocation6], %s575_s9, %s575_s9, %s576_s10  }
   0x6   :  { %s577_s11 = smov [#allocation2]   ;;  %s51_s15 = sshll.u32 %s649_s5, 4  ;;  %s52_s15 = int_to_ptr.hbm [resolvable:$true] %s51_s15 }
   0x7   :  { %s23_s12 = sshll.u32 %s577_s11, 4  ;;  %s578_s3 = smov [#allocation7]   ;;  %s24_s12 = int_to_ptr.vmem [resolvable:$true] %s23_s12 }
   0x8   :  { %29 = dma.hbm_to_vmem [thread:$0]  %s22_s8, 1024, %s24_s12, [#allocation3], %s575_s9, %s575_s9, %s576_s10  }
   0x9   :  { %s53_s16 = sshll.u32 %s578_s3, 4  ;;  %s54_s16 = int_to_ptr.vmem [resolvable:$true] %s53_s16 }
   0xa   :  { %59 = dma.hbm_to_vmem [thread:$0]  %s52_s15, 1024, %s54_s16, [#allocation6], %s575_s9, %s575_s9, %s576_s10  }
   0xb   :  { %568 = dma.done.wait [#allocation3], 1024  }
   0xc   :  { %569 = vsyncadd [#allocation3], 4294966272 }
   0xd   :  { %570 = dma.done.wait [#allocation6], 2048  }
   0xe   :  { %571 = vsyncadd [#allocation6], 4294965248  ;;  %v444_v0 = vld [vmem:[#allocation2 + $0x38] sm:$0xff]  ;;  %v443_v1 = vld [vmem:[#allocation2 + $0x30] sm:$0xff]  ;;  %s579_s21 = smov [#allocation8]   ;;  %s330_s25 = sshll.u32 %s651_s7, 4  ;;  %s331_s25 = int_to_ptr.hbm [resolvable:$true] %s330_s25 }
   0xf   :  { %143 = vmatpush.bf16.msra.mxu0 %v444_v0  ;;  %v452_v2 = vld [vmem:[#allocation5 + $0x38] sm:$0xff]  ;;  %v451_v3 = vld [vmem:[#allocation5 + $0x30] sm:$0xff]  ;;  %v442_v4 = vld [vmem:[#allocation2 + $0x28] sm:$0xff]  ;;  %s328_s22 = sshll.u32 %s579_s21, 4  ;;  %s329_s22 = int_to_ptr.vmem [resolvable:$true] %s328_s22 }
  0x10   :  { %226 = vmatpush.bf16.msra.mxu1 %v452_v2  ;;  %v450_v5 = vld [vmem:[#allocation5 + $0x28] sm:$0xff]  ;;  %v441_v6 = vld [vmem:[#allocation2 + $0x20] sm:$0xff]  ;;  %v440_v8 = vld [vmem:[#allocation2 + $0x18] sm:$0xff] }
  0x11   :  { %v449_v7 = vld [vmem:[#allocation5 + $0x20] sm:$0xff]  ;;  %v448_v9 = vld [vmem:[#allocation5 + $0x18] sm:$0xff]  ;;  %v439_v10 = vld [vmem:[#allocation2 + $0x10] sm:$0xff] }
  0x12   :  { %v447_v11 = vld [vmem:[#allocation5 + $0x10] sm:$0xff]  ;;  %v438_v12 = vld [vmem:[#allocation2 + $0x8] sm:$0xff]  ;;  %v437_v13 = vld [vmem:[#allocation2] sm:$0xff] }
  0x13   :  { %144 = vmatpush.bf16.msra.mxu0 %v443_v1  ;;  %v74_v14 = vld [vmem:[%s644_s0] sm:$0xf]  ;;  %v446_v15 = vld [vmem:[#allocation5 + $0x8] sm:$0xff]  ;;  %v460_v17 = vld [vmem:[#allocation7 + $0x38] sm:$0xff] }
  0x14   :  { %227 = vmatpush.bf16.msra.mxu1 %v451_v3  ;;  %v445_v16 = vld [vmem:[#allocation5] sm:$0xff]  ;;  %309 = vmatpush.bf16.msra.mxu2 %v460_v17  ;;  %v459_v18 = vld [vmem:[#allocation7 + $0x30] sm:$0xff]  ;;  %v458_v19 = vld [vmem:[#allocation7 + $0x28] sm:$0xff] }
  0x15   :  { %v457_v20 = vld [vmem:[#allocation7 + $0x20] sm:$0xff]  ;;  %v456_v21 = vld [vmem:[#allocation7 + $0x18] sm:$0xff]  ;;  %v455_v28 = vld [vmem:[#allocation7 + $0x10] sm:$0xff] }
  0x16   :  { %v467_v22 = vld [vmem:[%s646_s2] ss:$0 sm:$0xff]  ;;  %v454_v29 = vld [vmem:[#allocation7 + $0x8] sm:$0xff] }
  0x17   :  { %145 = vmatpush.bf16.msra.mxu0 %v442_v4  ;;  %v453_v30 = vld [vmem:[#allocation7] sm:$0xff] }
  0x18   :  { %228 = vmatpush.bf16.msra.mxu1 %v450_v5  ;;  %310 = vmatpush.bf16.msra.mxu2 %v459_v18  ;;  %v468_v31 = vld [vmem:[%s648_s4] ss:$0 sm:$0xff] }
  0x19   :  { %v469_v37 = vld [vmem:[%s650_s6] ss:$0 sm:$0xff] }
  0x1b   :  { %146 = vmatpush.bf16.msra.mxu0 %v441_v6 }
  0x1c   :  { %229 = vmatpush.bf16.msra.mxu1 %v449_v7  ;;  %311 = vmatpush.bf16.msra.mxu2 %v458_v19 }
  0x1f   :  { %147 = vmatpush.bf16.msra.mxu0 %v440_v8 }
  0x20   :  { %230 = vmatpush.bf16.msra.mxu1 %v448_v9  ;;  %312 = vmatpush.bf16.msra.mxu2 %v457_v20 }
  0x23   :  { %148 = vmatpush.bf16.msra.mxu0 %v439_v10 }
  0x24   :  { %231 = vmatpush.bf16.msra.mxu1 %v447_v11  ;;  %313 = vmatpush.bf16.msra.mxu2 %v456_v21 }
  0x27   :  { %149 = vmatpush.bf16.msra.mxu0 %v438_v12 }
  0x28   :  { %232 = vmatpush.bf16.msra.mxu1 %v446_v15  ;;  %314 = vmatpush.bf16.msra.mxu2 %v455_v28 }
  0x2b   :  { %150 = vmatpush.bf16.msra.mxu0 %v437_v13 }
  0x2c   :  { %233 = vmatpush.bf16.msra.mxu1 %v445_v16  ;;  %315 = vmatpush.bf16.msra.mxu2 %v454_v29 }
  0x2e   :  { %151 = vmatmul.bf16.vlgmr.msra.gmra.mxu0 %v74_v14 }
  0x30   :  { %316 = vmatpush.bf16.msra.mxu2 %v453_v30 }
  0xab   :  { %v152_v23 = vpop.f32.mrf.mxu0 }
  0xac   :  { %v153_v24 = vadd.f32 %v467_v22, %v152_v23 }
  0xae   :  { %v156_v25 = vmax.f32 %v153_v24, 0.0 }
  0xb0   :  { %v174_v26 = vpack.c.bf16 %v156_v25, %v156_v25 }
  0xb2   :  { %234 = vmatmul.bf16.vlgmr.msra.gmra.mxu1 %v174_v26 }
  0xb3   :  { %v154_v27 = vpop.f32.mrf.mxu0 }
 0x12f   :  { %v235_v32 = vpop.f32.mrf.mxu1 }
 0x130   :  { %v236_v33 = vadd.f32 %v468_v31, %v235_v32 }
 0x132   :  { %470 = vtanh.f32 %v236_v33 }
 0x137   :  { %v237_v34 = vpop.f32.mrf.mxu1 }
 0x138   :  { %v471_v35 = vpop.eup %470 }
 0x139   :  { %v257_v36 = vpack.c.bf16 %v471_v35, %v471_v35 }
 0x13b   :  { %317 = vmatmul.bf16.vlgmr.msra.gmra.mxu2 %v257_v36 }
 0x1be   :  { %v318_v38 = vpop.f32.mrf.mxu2 }
 0x1bf   :  { %v319_v39 = vadd.f32 %v469_v37, %v318_v38 }
 0x1c1   :  { %322 = vst [vmem:[#allocation8] sm:$0xff] %v319_v39 }
 0x1c2   :  { %333 = dma.vmem_to_hbm [thread:$0]  %s329_s22, 128, %s331_s25, [#allocation4]  }
 0x1c6   :  { %v320_v40 = vpop.f32.mrf.mxu2 }
 0x1c7   :  { %572 = dma.done.wait [#allocation4], 128  }
 0x1c8   :  { %573 = vsyncadd [#allocation4], 4294967168 }
 0x1c9   :  { %338 = vsyncpa [#allocation3], 1 }
 0x1ca   :  { %339 = vsyncpa [#allocation6], 1 }
 0x1cb   :  { %340 = vsyncpa [#allocation4], 1 }

</bundles_post_ra>
